<compile_context>
chip_gen: v5e
topology: v5e:2x2
jax: 0.10.0
libtpu: 0.0.40
codegen_flags: <defaults>
</compile_context>

<pallas_src>
import jax
import jax.numpy as jnp
from jax import lax
from jax.experimental import pallas as pl
from jax.experimental.pallas import tpu as pltpu


HID1 = 128   # first hidden layer (already lane-dense)
HID2 = 64    # logical second hidden layer (padded to 128 inside the kernel path)
LANE = 128   # TPU lane width
SUB = 8      # sublane width


def _round_up(x, m):
    return (x + m - 1) // m * m


def _cdiv(a, b):
    return (a + b - 1) // b


def dqn_kernel(x_ref, w1_ref, b1_ref, w2_ref, b2_ref, w3t_ref, b3t_ref, o_ref):
    """Fused 3-layer MLP for one batch tile (three MXU matmuls + VPU bias/ReLU).

    Weight/bias refs are full arrays resident in VMEM (constant index_map);
    only the x tile and the small transposed output tile stream per grid step.
    """
    x = x_ref[...]                                                        # (TM, F) bf16
    h1 = jnp.dot(x, w1_ref[...], preferred_element_type=jnp.float32) + b1_ref[...]
    h1 = jnp.maximum(h1, 0.0).astype(jnp.bfloat16)                        # (TM, 128)
    h2 = jnp.dot(h1, w2_ref[...], preferred_element_type=jnp.float32) + b2_ref[...]
    h2 = jnp.maximum(h2, 0.0).astype(jnp.bfloat16)                        # (TM, 128), cols 64: are 0
    # w3t: (out_pad, 128); contract the 128-dim of both -> (out_pad, TM):
    # batch lands on the lane axis, so the store is lane-dense and tiny.
    out_t = lax.dot_general(
        w3t_ref[...], h2,
        dimension_numbers=(((1,), (1,)), ((), ())),
        preferred_element_type=jnp.float32,
    ) + b3t_ref[...]                                                      # (out_pad, TM)
    o_ref[...] = out_t.astype(o_ref.dtype)


def dqn_forward(x, padded_params, output_size, *, tm=512):
    """Run the DQN MLP. `padded_params` are the lane-padded bf16/f32 params."""
    w1, b1, w2, b2, w3t, b3t = padded_params
    B, F = x.shape
    out_pad = w3t.shape[0]

    # Batch lives on the lane axis of the output -> batch tiles are multiples
    # of 128.  For large batches keep the grid length even so both v7x
    # TensorCores get equal work under dimension_semantics=("parallel",).
    tm_max = max(LANE, _round_up(tm, LANE))
    min_pad = _round_up(B, LANE)
    if min_pad <= tm_max:
        TM = min_pad
        num_steps = 1
    else:
        num_steps = _cdiv(B, tm_max)
        if num_steps > 1:
            num_steps = _round_up(num_steps, 2)
        TM = _round_up(_cdiv(B, num_steps), LANE)
    B_pad = TM * num_steps

    x_bf16 = x.astype(jnp.bfloat16)
    if B_pad != B:
        x_bf16 = jnp.pad(x_bf16, ((0, B_pad - B), (0, 0)))

    grid = (num_steps,)

    # Weights/biases: full-array blocks, constant index_map -> VMEM-resident.
    def full(a):
        return pl.BlockSpec(a.shape, lambda i: (0,) * a.ndim)

    flops = 2 * B_pad * (F * HID1 + HID1 * LANE + LANE * out_pad)
    bytes_accessed = (
        int(x_bf16.size) * 2
        + sum(int(p.size) * p.dtype.itemsize for p in padded_params)
        + out_pad * B_pad * 4
    )

    out_t = pl.pallas_call(
        dqn_kernel,
        out_shape=jax.ShapeDtypeStruct((out_pad, B_pad), jnp.float32),
        grid=grid,
        in_specs=[
            pl.BlockSpec((TM, F), lambda i: (i, 0)),
            full(w1), full(b1), full(w2), full(b2), full(w3t), full(b3t),
        ],
        out_specs=pl.BlockSpec((out_pad, TM), lambda i: (0, i)),
        compiler_params=pltpu.CompilerParams(
            dimension_semantics=("parallel",),
        ),
        cost_estimate=pl.CostEstimate(
            flops=flops, transcendentals=0, bytes_accessed=bytes_accessed),
    )(x_bf16, w1, b1, w2, b2, w3t, b3t)

    # Tiny (out_pad, B_pad) result: strip padding and restore (B, out) layout.
    return out_t[:output_size, :B].T


def init_params(key, input_size, output_size):
    """Logical (unpadded, f32) params mimicking PyTorch Linear default init."""
    dims = [(input_size, HID1), (HID1, HID2), (HID2, output_size)]
    params = []
    for fan_in, fan_out in dims:
        key, kw, kb = jax.random.split(key, 3)
        bound = 1.0 / jnp.sqrt(fan_in)
        w = jax.random.uniform(kw, (fan_in, fan_out), jnp.float32, -bound, bound)
        b = jax.random.uniform(kb, (1, fan_out), jnp.float32, -bound, bound)
        params.extend([w, b])
    return tuple(params)


def pad_params(params, output_size):
    """Prepare kernel params.

    * pad the 64-wide hidden dim to 128 (zero pad: ReLU(0)=0 and zero w3 rows
      contribute nothing, so the result equals the unpadded computation)
    * pre-transpose the last layer: w3t (out_pad, 128), b3t (out_pad, 1), so
      the kernel can write a batch-on-lanes (out_pad, TM) output tile
    * weights in bf16, biases in f32
    """
    w1, b1, w2, b2, w3, b3 = params
    out_pad = _round_up(output_size, SUB)

    def pad2(a, rows, cols):
        return jnp.pad(a, ((0, rows - a.shape[0]), (0, cols - a.shape[1])))

    w2p = pad2(w2, HID1, LANE)
    b2p = pad2(b2, 1, LANE)
    w3t = pad2(w3, LANE, out_pad).T          # (out_pad, 128)
    b3t = pad2(b3, 1, out_pad).T             # (out_pad, 1)
    return (
        w1.astype(jnp.bfloat16), b1,
        w2p.astype(jnp.bfloat16), b2p,
        w3t.astype(jnp.bfloat16), b3t,
    )


def reference_forward(x, params):
    w1, b1, w2, b2, w3, b3 = params
    h1 = jnp.maximum(x @ w1 + b1, 0.0)
    h2 = jnp.maximum(h1 @ w2 + b2, 0.0)
    return h2 @ w3 + b3


if __name__ == "__main__":
    key = jax.random.PRNGKey(0)
    k_x, k_p = jax.random.split(key)

    batch = 8
    input_size = 32   # traffic-state feature vector size
    output_size = 8   # number of traffic-light phase actions

    x = jax.random.normal(k_x, (batch, input_size), dtype=jnp.float32)
    params = init_params(k_p, input_size, output_size)
    padded = pad_params(params, output_size)

    out = dqn_forward(x, padded, output_size)
    jax.block_until_ready(out)

    ref = reference_forward(x, params)
    assert out.shape == (batch, output_size)
    # bf16 weights/activations with f32 accumulation -> loosened tolerance.
    assert jnp.allclose(out, ref, atol=5e-2, rtol=5e-2), (
        float(jnp.max(jnp.abs(out - ref))))

    print("KERNEL_OK")
</pallas_src>

<mosaic_0001>
module attributes {stable_mosaic.version = 11 : i64} {
  func.func @dqn_kernel(%arg0: i32, %arg1: memref<128x32xbf16, #tpu.memory_space<vmem>>, %arg2: memref<32x128xbf16, #tpu.memory_space<vmem>>, %arg3: memref<1x128xf32, #tpu.memory_space<vmem>>, %arg4: memref<128x128xbf16, #tpu.memory_space<vmem>>, %arg5: memref<1x128xf32, #tpu.memory_space<vmem>>, %arg6: memref<8x128xbf16, #tpu.memory_space<vmem>>, %arg7: memref<8x1xf32, #tpu.memory_space<vmem>>, %arg8: memref<8x128xf32, #tpu.memory_space<vmem>>) attributes {dimension_semantics = [#tpu.dimension_semantics<parallel>], iteration_bounds = array<i64: 1>, scalar_prefetch = 0 : i64, scratch_operands = 0 : i64, tpu.core_type = #tpu.core_type<tc>, window_params = [{transform_indices = @transform_0, window_bounds = array<i64: 128, 32>}, {pipeline_mode = #tpu.pipeline_mode<synchronous>, transform_indices = @transform_1, window_bounds = array<i64: 32, 128>}, {pipeline_mode = #tpu.pipeline_mode<synchronous>, transform_indices = @transform_2, window_bounds = array<i64: 1, 128>}, {pipeline_mode = #tpu.pipeline_mode<synchronous>, transform_indices = @transform_3, window_bounds = array<i64: 128, 128>}, {pipeline_mode = #tpu.pipeline_mode<synchronous>, transform_indices = @transform_4, window_bounds = array<i64: 1, 128>}, {pipeline_mode = #tpu.pipeline_mode<synchronous>, transform_indices = @transform_5, window_bounds = array<i64: 8, 128>}, {pipeline_mode = #tpu.pipeline_mode<synchronous>, transform_indices = @transform_6, window_bounds = array<i64: 8, 1>}, {transform_indices = @transform_7, window_bounds = array<i64: 8, 128>}]} {
    %c0 = arith.constant 0 : index
    %c0_0 = arith.constant 0 : index
    %0 = vector.load %arg1[%c0, %c0_0] : memref<128x32xbf16, #tpu.memory_space<vmem>>, vector<128x32xbf16>
    %c0_1 = arith.constant 0 : index
    %c0_2 = arith.constant 0 : index
    %1 = vector.load %arg2[%c0_1, %c0_2] : memref<32x128xbf16, #tpu.memory_space<vmem>>, vector<32x128xbf16>
    %cst = arith.constant dense<0.000000e+00> : vector<128x128xf32>
    %2 = tpu.matmul %0, %1, %cst {dimension_numbers = #tpu.dot_dimension_numbers<[1], [0], [0], [1], [0, 0, 1, 1], [], []>} : vector<128x32xbf16>, vector<32x128xbf16>, vector<128x128xf32> -> vector<128x128xf32>
    %c0_3 = arith.constant 0 : index
    %c0_4 = arith.constant 0 : index
    %3 = vector.load %arg3[%c0_3, %c0_4] : memref<1x128xf32, #tpu.memory_space<vmem>>, vector<1x128xf32>
    %4 = vector.broadcast %3 : vector<1x128xf32> to vector<128x128xf32>
    %5 = arith.addf %2, %4 : vector<128x128xf32>
    %cst_5 = arith.constant 0.000000e+00 : f32
    %6 = vector.broadcast %cst_5 : f32 to vector<128x128xf32>
    %7 = arith.maximumf %5, %6 : vector<128x128xf32>
    %8 = arith.truncf %7 : vector<128x128xf32> to vector<128x128xbf16>
    %c0_6 = arith.constant 0 : index
    %c0_7 = arith.constant 0 : index
    %9 = vector.load %arg4[%c0_6, %c0_7] : memref<128x128xbf16, #tpu.memory_space<vmem>>, vector<128x128xbf16>
    %cst_8 = arith.constant dense<0.000000e+00> : vector<128x128xf32>
    %10 = tpu.matmul %8, %9, %cst_8 {dimension_numbers = #tpu.dot_dimension_numbers<[1], [0], [0], [1], [0, 0, 1, 1], [], []>} : vector<128x128xbf16>, vector<128x128xbf16>, vector<128x128xf32> -> vector<128x128xf32>
    %c0_9 = arith.constant 0 : index
    %c0_10 = arith.constant 0 : index
    %11 = vector.load %arg5[%c0_9, %c0_10] : memref<1x128xf32, #tpu.memory_space<vmem>>, vector<1x128xf32>
    %12 = vector.broadcast %11 : vector<1x128xf32> to vector<128x128xf32>
    %13 = arith.addf %10, %12 : vector<128x128xf32>
    %cst_11 = arith.constant 0.000000e+00 : f32
    %14 = vector.broadcast %cst_11 : f32 to vector<128x128xf32>
    %15 = arith.maximumf %13, %14 : vector<128x128xf32>
    %16 = arith.truncf %15 : vector<128x128xf32> to vector<128x128xbf16>
    %c0_12 = arith.constant 0 : index
    %c0_13 = arith.constant 0 : index
    %17 = vector.load %arg6[%c0_12, %c0_13] : memref<8x128xbf16, #tpu.memory_space<vmem>>, vector<8x128xbf16>
    %cst_14 = arith.constant dense<0.000000e+00> : vector<8x128xf32>
    %18 = tpu.matmul %17, %16, %cst_14 {dimension_numbers = #tpu.dot_dimension_numbers<[1], [1], [0], [0], [0, 0, 1, 0], [], []>} : vector<8x128xbf16>, vector<128x128xbf16>, vector<8x128xf32> -> vector<8x128xf32>
    %c0_15 = arith.constant 0 : index
    %c0_16 = arith.constant 0 : index
    %19 = vector.load %arg7[%c0_15, %c0_16] : memref<8x1xf32, #tpu.memory_space<vmem>>, vector<8x1xf32>
    %20 = vector.broadcast %19 : vector<8x1xf32> to vector<8x128xf32>
    %21 = arith.addf %18, %20 : vector<8x128xf32>
    %c0_17 = arith.constant 0 : index
    %c0_18 = arith.constant 0 : index
    %22 = vector.load %arg8[%c0_17, %c0_18] : memref<8x128xf32, #tpu.memory_space<vmem>>, vector<8x128xf32>
    tpu.vector_store %arg8[%c0_17, %c0_18], %21 {strides = array<i32>} : memref<8x128xf32, #tpu.memory_space<vmem>>, vector<8x128xf32>,
    return
  }
  func.func @transform_0(%arg0: i32) -> (i32, i32) {
    %c0_i32 = arith.constant 0 : i32
    %c0_i32_0 = arith.constant 0 : i32
    return %arg0, %c0_i32 : i32, i32
  }
  func.func @transform_1(%arg0: i32) -> (i32, i32) {
    %c0_i32 = arith.constant 0 : i32
    %c0_i32_0 = arith.constant 0 : i32
    %c0_i32_1 = arith.constant 0 : i32
    return %c0_i32, %c0_i32_0 : i32, i32
  }
  func.func @transform_2(%arg0: i32) -> (i32, i32) {
    %c0_i32 = arith.constant 0 : i32
    %c0_i32_0 = arith.constant 0 : i32
    %c0_i32_1 = arith.constant 0 : i32
    return %c0_i32, %c0_i32_0 : i32, i32
  }
  func.func @transform_3(%arg0: i32) -> (i32, i32) {
    %c0_i32 = arith.constant 0 : i32
    %c0_i32_0 = arith.constant 0 : i32
    %c0_i32_1 = arith.constant 0 : i32
    return %c0_i32, %c0_i32_0 : i32, i32
  }
  func.func @transform_4(%arg0: i32) -> (i32, i32) {
    %c0_i32 = arith.constant 0 : i32
    %c0_i32_0 = arith.constant 0 : i32
    %c0_i32_1 = arith.constant 0 : i32
    return %c0_i32, %c0_i32_0 : i32, i32
  }
  func.func @transform_5(%arg0: i32) -> (i32, i32) {
    %c0_i32 = arith.constant 0 : i32
    %c0_i32_0 = arith.constant 0 : i32
    %c0_i32_1 = arith.constant 0 : i32
    return %c0_i32, %c0_i32_0 : i32, i32
  }
  func.func @transform_6(%arg0: i32) -> (i32, i32) {
    %c0_i32 = arith.constant 0 : i32
    %c0_i32_0 = arith.constant 0 : i32
    %c0_i32_1 = arith.constant 0 : i32
    return %c0_i32, %c0_i32_0 : i32, i32
  }
  func.func @transform_7(%arg0: i32) -> (i32, i32) {
    %c0_i32 = arith.constant 0 : i32
    %c0_i32_0 = arith.constant 0 : i32
    return %c0_i32, %arg0 : i32, i32
  }
}

</mosaic_0001>

<bundles_post_ra>
// kernel: tpu_custom_call.1
= control target key start
LH: loop header
LB: loop body
LE: loop exit
PB: predicated region body
PF: predicated region fallthrough
CT: control target
= control target key end

     0   :  { %s636_s0 = inlined_call_operand.vmem [shape: bf16[128,32], index: 0, kind: input, shape index: {}]   ;;  %s637_s1 = inlined_call_operand.vmem [shape: bf16[32,128], index: 1, kind: input, shape index: {}]   ;;  %s638_s2 = inlined_call_operand.vmem [shape: f32[1,128], index: 2, kind: input, shape index: {}]   ;;  %s639_s3 = inlined_call_operand.vmem [shape: bf16[128,128], index: 3, kind: input, shape index: {}]   ;;  %s640_s4 = inlined_call_operand.vmem [shape: f32[1,128], index: 4, kind: input, shape index: {}]   ;;  %s641_s5 = inlined_call_operand.vmem [shape: bf16[8,128], index: 5, kind: input, shape index: {}]   ;;  %s642_s6 = inlined_call_operand.vmem [shape: f32[8,1], index: 6, kind: input, shape index: {}]   ;;  %s643_s7 = inlined_call_operand.hbm [shape: f32[8,128], index: 7, kind: output, shape index: {}]  }
   0x1   :  { %v469_v0 = vld [vmem:[%s637_s1 + $0x8] sm:$0xff]  ;;  %v468_v1 = vld [vmem:[%s637_s1] sm:$0xff] }
   0x2   :  { %135 = vmatpush.bf16.msra.mxu0 %v469_v0 }
   0x3   :  { %12 = vsyncpa [#allocation3], 0  ;;  %v460_v2 = vld [vmem:[%s636_s0] sm:$0xff]  ;;  %vm104_vm0 = vcmask 261120   ;;  %v461_v3 = vld [vmem:[%s636_s0 + $0x8] sm:$0xff]  ;;  %s518_s16 = smov [#allocation2]  }
   0x4   :  { %v462_v4 = vld [vmem:[%s636_s0 + $0x10] sm:$0xff]  ;;  %v463_v5 = vld [vmem:[%s636_s0 + $0x18] sm:$0xff]  ;;  %v464_v6 = vld [vmem:[%s636_s0 + $0x20] sm:$0xff]  ;;  %s369_s17 = sshll.u32 %s518_s16, 4  ;;  %s371_s19 = sshll.u32 %s643_s7, 4  ;;  %s370_s17 = int_to_ptr.vmem [resolvable:$true] %s369_s17  ;;  %s372_s19 = int_to_ptr.hbm [resolvable:$true] %s371_s19 }
   0x5   :  { %v477_v7 = vld [vmem:[%s639_s3 + $0x38] sm:$0xff]  ;;  %v465_v8 = vld [vmem:[%s636_s0 + $0x28] sm:$0xff]  ;;  %v476_v9 = vld [vmem:[%s639_s3 + $0x30] sm:$0xff] }
   0x6   :  { %136 = vmatpush.bf16.msra.mxu0 %v468_v1  ;;  %270 = vmatpush.bf16.msra.mxu1 %v477_v7  ;;  %v475_v10 = vld [vmem:[%s639_s3 + $0x28] sm:$0xff]  ;;  %v474_v11 = vld [vmem:[%s639_s3 + $0x20] sm:$0xff]  ;;  %v473_v12 = vld [vmem:[%s639_s3 + $0x18] sm:$0xff] }
   0x7   :  { %478 = vmatpush.bf16.msra.mxu3 %v477_v7  ;;  %v466_v13 = vld [vmem:[%s636_s0 + $0x30] sm:$0xff]  ;;  %v471_v15 = vld [vmem:[%s639_s3 + $0x8] sm:$0xff]  ;;  %v470_v16 = vld [vmem:[%s639_s3] sm:$0xff] }
   0x8   :  { %v472_v14 = vld [vmem:[%s639_s3 + $0x10] sm:$0xff]  ;;  %v467_v17 = vld [vmem:[%s636_s0 + $0x38] sm:$0xff]  ;;  %v489_v19 = vld [vmem:[%s638_s2] ss:$0 sm:$0xff] }
   0x9   :  { %420 = vmatmul.msk.bf16.vlgmr.msra.gmra.mxu0 %vm104_vm0, %v460_v2 }
   0xa   :  { %271 = vmatpush.bf16.msra.mxu1 %v476_v9 }
   0xb   :  { %479 = vmatpush.bf16.msra.mxu3 %v476_v9 }
   0xe   :  { %272 = vmatpush.bf16.msra.mxu1 %v475_v10 }
   0xf   :  { %480 = vmatpush.bf16.msra.mxu3 %v475_v10 }
  0x12   :  { %273 = vmatpush.bf16.msra.mxu1 %v474_v11 }
  0x13   :  { %481 = vmatpush.bf16.msra.mxu3 %v474_v11 }
  0x16   :  { %274 = vmatpush.bf16.msra.mxu1 %v473_v12 }
  0x17   :  { %482 = vmatpush.bf16.msra.mxu3 %v473_v12  ;;  %v490_v12 = vld [vmem:[%s640_s4] ss:$0 sm:$0xff] }
  0x19   :  { %421 = vmatmul.msk.bf16.gmra.mxu0 %vm104_vm0, %v461_v3 }
  0x1a   :  { %275 = vmatpush.bf16.msra.mxu1 %v472_v14 }
  0x1b   :  { %483 = vmatpush.bf16.msra.mxu3 %v472_v14 }
  0x1e   :  { %276 = vmatpush.bf16.msra.mxu1 %v471_v15 }
  0x1f   :  { %484 = vmatpush.bf16.msra.mxu3 %v471_v15 }
  0x22   :  { %277 = vmatpush.bf16.msra.mxu1 %v470_v16 }
  0x23   :  { %485 = vmatpush.bf16.msra.mxu3 %v470_v16 }
  0x29   :  { %422 = vmatmul.msk.bf16.gmra.mxu0 %vm104_vm0, %v462_v4 }
  0x39   :  { %423 = vmatmul.msk.bf16.gmra.mxu0 %vm104_vm0, %v463_v5 }
  0x49   :  { %424 = vmatmul.msk.bf16.gmra.mxu0 %vm104_vm0, %v464_v6 }
  0x59   :  { %425 = vmatmul.msk.bf16.gmra.mxu0 %vm104_vm0, %v465_v8 }
  0x69   :  { %426 = vmatmul.msk.bf16.gmra.mxu0 %vm104_vm0, %v466_v13 }
  0x79   :  { %427 = vmatmul.msk.bf16.gmra.mxu0 %vm104_vm0, %v467_v17 }
  0x86   :  { %v138_v18 = vpop.f32.mrf.mxu0 }
  0x87   :  { %v139_v20 = vadd.f32 %v489_v19, %v138_v18 }
  0x89   :  { %v178_v23 = vmax.f32 %v139_v20, 0.0 }
  0x8e   :  { %v140_v21 = vpop.f32.mrf.mxu0 }
  0x8f   :  { %v141_v22 = vadd.f32 %v489_v19, %v140_v21 }
  0x91   :  { %v179_v24 = vmax.f32 %v141_v22, 0.0 }
  0x93   :  { %v194_v25 = vpack.c.bf16 %v179_v24, %v178_v23 }
  0x95   :  { %278 = vmatmul.bf16.vlgmr.msra.gmra.mxu1 %v194_v25 }
  0x96   :  { %v143_v26 = vpop.f32.mrf.mxu0 }
  0x97   :  { %v144_v27 = vadd.f32 %v489_v19, %v143_v26 }
  0x99   :  { %v180_v30 = vmax.f32 %v144_v27, 0.0 }
  0x9e   :  { %v145_v28 = vpop.f32.mrf.mxu0 }
  0x9f   :  { %v146_v29 = vadd.f32 %v489_v19, %v145_v28 }
  0xa1   :  { %v181_v31 = vmax.f32 %v146_v29, 0.0 }
  0xa3   :  { %v195_v32 = vpack.c.bf16 %v181_v31, %v180_v30 }
  0xa5   :  { %283 = vmatmul.bf16.gmra.mxu1 %v195_v32 }
  0xa6   :  { %v148_v33 = vpop.f32.mrf.mxu0 }
  0xa7   :  { %v149_v34 = vadd.f32 %v489_v19, %v148_v33 }
  0xa9   :  { %v182_v37 = vmax.f32 %v149_v34, 0.0 }
  0xae   :  { %v150_v35 = vpop.f32.mrf.mxu0 }
  0xaf   :  { %v151_v36 = vadd.f32 %v489_v19, %v150_v35 }
  0xb1   :  { %v183_v38 = vmax.f32 %v151_v36, 0.0 }
  0xb3   :  { %v196_v39 = vpack.c.bf16 %v183_v38, %v182_v37 }
  0xb5   :  { %288 = vmatmul.bf16.gmra.mxu1 %v196_v39 }
  0xb6   :  { %v153_v40 = vpop.f32.mrf.mxu0 }
  0xb7   :  { %v154_v41 = vadd.f32 %v489_v19, %v153_v40 }
  0xb9   :  { %v184_v44 = vmax.f32 %v154_v41, 0.0 }
  0xbe   :  { %v155_v42 = vpop.f32.mrf.mxu0 }
  0xbf   :  { %v156_v43 = vadd.f32 %v489_v19, %v155_v42 }
  0xc1   :  { %v185_v45 = vmax.f32 %v156_v43, 0.0 }
  0xc3   :  { %v197_v46 = vpack.c.bf16 %v185_v45, %v184_v44 }
  0xc5   :  { %293 = vmatmul.bf16.gmra.mxu1 %v197_v46 }
  0xc6   :  { %v158_v47 = vpop.f32.mrf.mxu0 }
  0xc7   :  { %v159_v48 = vadd.f32 %v489_v19, %v158_v47 }
  0xc9   :  { %v186_v51 = vmax.f32 %v159_v48, 0.0 }
  0xce   :  { %v160_v49 = vpop.f32.mrf.mxu0 }
  0xcf   :  { %v161_v50 = vadd.f32 %v489_v19, %v160_v49 }
  0xd1   :  { %v187_v52 = vmax.f32 %v161_v50, 0.0 }
  0xd3   :  { %v198_v53 = vpack.c.bf16 %v187_v52, %v186_v51 }
  0xd5   :  { %298 = vmatmul.bf16.gmra.mxu1 %v198_v53 }
  0xd6   :  { %v163_v54 = vpop.f32.mrf.mxu0 }
  0xd7   :  { %v164_v55 = vadd.f32 %v489_v19, %v163_v54 }
  0xd9   :  { %v188_v58 = vmax.f32 %v164_v55, 0.0 }
  0xde   :  { %v165_v56 = vpop.f32.mrf.mxu0 }
  0xdf   :  { %v166_v57 = vadd.f32 %v489_v19, %v165_v56 }
  0xe1   :  { %v189_v59 = vmax.f32 %v166_v57, 0.0 }
  0xe3   :  { %v199_v60 = vpack.c.bf16 %v189_v59, %v188_v58 }
  0xe5   :  { %303 = vmatmul.bf16.vlgmr.msra.gmra.mxu3 %v199_v60 }
  0xe6   :  { %v168_v61 = vpop.f32.mrf.mxu0 }
  0xe7   :  { %v169_v62 = vadd.f32 %v489_v19, %v168_v61 }
  0xe9   :  { %v190_v1 = vmax.f32 %v169_v62, 0.0 }
  0xee   :  { %v170_v63 = vpop.f32.mrf.mxu0 }
  0xef   :  { %v171_v0 = vadd.f32 %v489_v19, %v170_v63 }
  0xf1   :  { %v191_v2 = vmax.f32 %v171_v0, 0.0  ;;  %v344_v0 = vld [vmem:[%s642_s6] sm:$0xff] }
  0xf3   :  { %v200_v3 = vpack.c.bf16 %v191_v2, %v190_v1  ;;  %v517_v2 = vmov 0  }
  0xf4   :  { %488 = vset.pattern.permute.xlu0 %v517_v2 }
  0xf5   :  { %308 = vmatmul.bf16.gmra.mxu3 %v200_v3  ;;  %347 = vperm.xlu0 %488, %v344_v0  }
  0xf6   :  { %v173_v4 = vpop.f32.mrf.mxu0 }
  0xf7   :  { %v174_v5 = vadd.f32 %v489_v19, %v173_v4 }
  0xf9   :  { %v192_v8 = vmax.f32 %v174_v5, 0.0 }
  0xfe   :  { %v175_v6 = vpop.f32.mrf.mxu0 }
  0xff   :  { %v176_v7 = vadd.f32 %v489_v19, %v175_v6  ;;  %v343_v6 = vld [vmem:[%s641_s5] sm:$0xf] }
 0x101   :  { %v193_v9 = vmax.f32 %v176_v7, 0.0 }
 0x103   :  { %v201_v10 = vpack.c.bf16 %v193_v9, %v192_v8 }
 0x105   :  { %313 = vmatmul.bf16.gmra.mxu3 %v201_v10 }
 0x112   :  { %v279_v11 = vpop.f32.mrf.mxu1 }
 0x113   :  { %v280_v13 = vadd.f32 %v490_v12, %v279_v11 }
 0x115   :  { %v319_v16 = vmax.f32 %v280_v13, 0.0 }
 0x11a   :  { %v281_v14 = vpop.f32.mrf.mxu1 }
 0x11b   :  { %v282_v15 = vadd.f32 %v490_v12, %v281_v14 }
 0x11d   :  { %v320_v17 = vmax.f32 %v282_v15, 0.0 }
 0x11f   :  { %v335_v18 = vpack.c.bf16 %v320_v17, %v319_v16 }
 0x122   :  { %v284_v20 = vpop.f32.mrf.mxu1 }
 0x123   :  { %v285_v21 = vadd.f32 %v490_v12, %v284_v20 }
 0x125   :  { %v321_v19 = vmax.f32 %v285_v21, 0.0 }
 0x12a   :  { %v286_v22 = vpop.f32.mrf.mxu1 }
 0x12b   :  { %v287_v23 = vadd.f32 %v490_v12, %v286_v22 }
 0x12d   :  { %v322_v24 = vmax.f32 %v287_v23, 0.0 }
 0x12f   :  { %v336_v25 = vpack.c.bf16 %v322_v24, %v321_v19 }
 0x132   :  { %v289_v27 = vpop.f32.mrf.mxu1 }
 0x133   :  { %v290_v1 = vadd.f32 %v490_v12, %v289_v27 }
 0x135   :  { %v323_v4 = vmax.f32 %v290_v1, 0.0 }
 0x13a   :  { %v291_v30 = vpop.f32.mrf.mxu1 }
 0x13b   :  { %v292_v62 = vadd.f32 %v490_v12, %v291_v30 }
 0x13d   :  { %v324_v3 = vmax.f32 %v292_v62, 0.0 }
 0x13f   :  { %v337_v5 = vpack.c.bf16 %v324_v3, %v323_v4 }
 0x142   :  { %v294_v32 = vpop.f32.mrf.mxu1 }
 0x143   :  { %v295_v59 = vadd.f32 %v490_v12, %v294_v32 }
 0x145   :  { %v325_v61 = vmax.f32 %v295_v59, 0.0 }
 0x14a   :  { %v296_v34 = vpop.f32.mrf.mxu1 }
 0x14b   :  { %v297_v57 = vadd.f32 %v490_v12, %v296_v34 }
 0x14d   :  { %v326_v60 = vmax.f32 %v297_v57, 0.0 }
 0x14f   :  { %v338_v63 = vpack.c.bf16 %v326_v60, %v325_v61 }
 0x152   :  { %v299_v43 = vpop.f32.mrf.mxu1 }
 0x153   :  { %v300_v54 = vadd.f32 %v490_v12, %v299_v43 }
 0x155   :  { %v327_v56 = vmax.f32 %v300_v54, 0.0 }
 0x15a   :  { %v301_v50 = vpop.f32.mrf.mxu1 }
 0x15b   :  { %v302_v52 = vadd.f32 %v490_v12, %v301_v50 }
 0x15d   :  { %v328_v55 = vmax.f32 %v302_v52, 0.0 }
 0x15f   :  { %v339_v58 = vpack.c.bf16 %v328_v55, %v327_v56 }
 0x167   :  { %v348_v7 = vpop.permute.xlu0 %347 }
 0x168   :  { %v304_v26 = vpop.f32.mrf.mxu3 }
 0x169   :  { %v305_v48 = vadd.f32 %v490_v12, %v304_v26 }
 0x16b   :  { %v329_v51 = vmax.f32 %v305_v48, 0.0 }
 0x170   :  { %v306_v28 = vpop.f32.mrf.mxu3 }
 0x171   :  { %v307_v46 = vadd.f32 %v490_v12, %v306_v28 }
 0x173   :  { %v330_v49 = vmax.f32 %v307_v46, 0.0 }
 0x175   :  { %v340_v53 = vpack.c.bf16 %v330_v49, %v329_v51 }
 0x178   :  { %v309_v29 = vpop.f32.mrf.mxu3 }
 0x179   :  { %v310_v42 = vadd.f32 %v490_v12, %v309_v29 }
 0x17b   :  { %v331_v45 = vmax.f32 %v310_v42, 0.0 }
 0x180   :  { %v311_v31 = vpop.f32.mrf.mxu3 }
 0x181   :  { %v312_v40 = vadd.f32 %v490_v12, %v311_v31 }
 0x183   :  { %v332_v44 = vmax.f32 %v312_v40, 0.0 }
 0x185   :  { %v341_v47 = vpack.c.bf16 %v332_v44, %v331_v45 }
 0x188   :  { %v314_v33 = vpop.f32.mrf.mxu3 }
 0x189   :  { %v315_v35 = vadd.f32 %v490_v12, %v314_v33 }
 0x18b   :  { %v333_v38 = vmax.f32 %v315_v35, 0.0 }
 0x190   :  { %v316_v36 = vpop.f32.mrf.mxu3 }
 0x191   :  { %v317_v37 = vadd.f32 %v490_v12, %v316_v36 }
 0x193   :  { %v334_v39 = vmax.f32 %v317_v37, 0.0 }
 0x195   :  { %v342_v41 = vpack.c.bf16 %v334_v39, %v333_v38 }
 0x197   :  { %350 = vmatpush.bf16.xpose.msra.mxu2 %v342_v41 }
 0x19f   :  { %351 = vmatpush.bf16.xpose.msra.mxu2 %v341_v47 }
 0x1a7   :  { %352 = vmatpush.bf16.xpose.msra.mxu2 %v340_v53 }
 0x1af   :  { %353 = vmatpush.bf16.xpose.msra.mxu2 %v339_v58 }
 0x1b7   :  { %354 = vmatpush.bf16.xpose.msra.mxu2 %v338_v63 }
 0x1bf   :  { %355 = vmatpush.bf16.xpose.msra.mxu2 %v337_v5 }
 0x1c7   :  { %356 = vmatpush.bf16.xpose.msra.mxu2 %v336_v25 }
 0x1cf   :  { %357 = vmatpush.bf16.xpose.msra.mxu2 %v335_v18 }
 0x1d6   :  { %358 = vmatmul.bf16.vlgmr.msra.gmra.mxu2 %v343_v6 }
 0x259   :  { %v359_v8 = vpop.f32.mrf.mxu2 }
 0x25a   :  { %v360_v9 = vadd.f32 %v359_v8, %v348_v7 }
 0x25c   :  { %363 = vst [vmem:[#allocation2] sm:$0xff] %v360_v9 }
 0x25d   :  { %374 = dma.vmem_to_hbm [thread:$0]  %s370_s17, 128, %s372_s19, [#allocation3]  }
 0x261   :  { %v361_v10 = vpop.f32.mrf.mxu2 }
 0x262   :  { %515 = dma.done.wait [#allocation3], 128  }
 0x263   :  { %516 = vsyncadd [#allocation3], 4294967168 }
 0x264   :  { %379 = vsyncpa [#allocation3], 1 }

</bundles_post_ra>
